<compile_context>
chip_gen: v5e
topology: v5e:2x2
jax: 0.10.0
libtpu: 0.0.40
codegen_flags: <defaults>
</compile_context>

<pallas_src>
import jax
import jax.numpy as jnp
from jax.experimental import pallas as pl
from jax.experimental.pallas import tpu as pltpu


_M_TILE = 512        # sublane axis of src / out blocks
_S_TILE_MAX = 1024   # lane axis of out / one-hot blocks
_N_TILE = 1024       # contraction (gather) axis
_VMEM_LIMIT = 48 * 1024 * 1024   # safe on v5e/v6e (128 MiB) and v7x (64 MiB)


def _round_up(a, b):
    return ((a + b - 1) // b) * b


def _make_gather_kernel(n_total, n_tile, mask_tail, split_f32):
    """Builds one grid step of out[M,S] = src[M,N] @ onehot(idx)[N,S]."""

    def kernel(idx_ref, src_ref, out_ref, acc_ref):
        # idx_ref: (1, S_t) int32 (lane-dense, shared by every M/N tile)
        # src_ref: (M_t, N_t)
        # out_ref: (M_t, S_t)
        # acc_ref: (M_t, S_t) float32 scratch, persists across the N grid axis
        k = pl.program_id(2)

        @pl.when(k == 0)
        def _init():
            acc_ref[...] = jnp.zeros_like(acc_ref)

        n_t = src_ref.shape[1]
        s_t = idx_ref.shape[1]
        base = k * n_tile

        # One-hot selector: onehot[r, c] = 1 iff (global row id of r) == idx[c].
        # Padded idx lanes are -1 and never match.
        row = jax.lax.broadcasted_iota(jnp.int32, (n_t, s_t), 0) + base
        onehot = (row == idx_ref[...]).astype(jnp.bfloat16)

        src = src_ref[...]
        if mask_tail:
            # Only the last N tile is partial; Pallas edge padding is
            # unspecified and NaN * 0 = NaN would poison the accumulator, so
            # zero the out-of-range columns of src.
            col = jax.lax.broadcasted_iota(jnp.int32, src.shape, 1) + base
            src = jnp.where(col < n_total, src, jnp.zeros_like(src))

        if split_f32:
            # Exact f32 gather in 3 default-precision bf16 MXU passes:
            # src = hi + mid + lo (successive bf16 roundings of the residual);
            # the one-hot operand is exactly bf16-representable, so 3 passes
            # reconstruct the f32 result (HIGHEST would cost 6 passes).
            hi = src.astype(jnp.bfloat16)
            r1 = src - hi.astype(jnp.float32)
            mid = r1.astype(jnp.bfloat16)
            lo = (r1 - mid.astype(jnp.float32)).astype(jnp.bfloat16)
            part = jnp.dot(hi, onehot, preferred_element_type=jnp.float32)
            part = part + jnp.dot(mid, onehot, preferred_element_type=jnp.float32)
            part = part + jnp.dot(lo, onehot, preferred_element_type=jnp.float32)
        else:
            part = jnp.dot(src, onehot.astype(src.dtype),
                           preferred_element_type=jnp.float32)

        acc_ref[...] += part

        @pl.when(k == pl.num_programs(2) - 1)
        def _store():
            out_ref[...] = acc_ref[...].astype(out_ref.dtype)

    return kernel


def _pick_n_tile(n, preferred):
    """Pick an N tile. Returns (n_tile, needs_tail_mask)."""
    if n <= preferred:
        return n, False                       # full extent, no partial tile
    for cand in range(preferred, preferred // 2, -128):
        if n % cand == 0:
            return cand, False                # exact tiling, no masking needed
    return preferred, True                    # partial last tile, mask in kernel


def _gather_last_dim_2d(src, idx):
    """src: [M, N], idx: [S] -> [M, S] == src[:, idx] (one-hot gather on MXU)."""
    m, n = src.shape
    s = idx.shape[0]

    if not jnp.issubdtype(src.dtype, jnp.floating):
        # TODO(synk): integer dtypes have no clean MXU path (esp. v7x); plain gather.
        return jnp.take(src, idx, axis=1)

    # TODO(synk): for very sparse sampling (S << N) a scalar-prefetch DMA
    # gather path would read only ~M*S instead of M*N; not implemented here.

    split_f32 = src.dtype == jnp.float32

    m_t = m if m <= _M_TILE else _M_TILE
    s_t = s if s <= 128 else min(_round_up(s, 128), _S_TILE_MAX)
    n_t, mask_tail = _pick_n_tile(n, _N_TILE)

    # v7x has two TensorCores: make sure at least one "parallel" grid axis has
    # >= 2 blocks.  Prefer splitting M (splitting S re-streams src from HBM).
    if pl.cdiv(m, m_t) == 1 and pl.cdiv(s, s_t) == 1:
        if m >= 16:
            m_t = _round_up(pl.cdiv(m, 2), 8)
        elif s_t >= 256:
            s_t = max(128, (s_t // 2) // 128 * 128)

    s_pad = _round_up(s, s_t)
    idx2d = idx.reshape(1, s).astype(jnp.int32)
    if s_pad > s:
        # Sentinel -1 never matches a row id, so padded lanes stay zero instead
        # of relying on the masked partial store to hide junk.
        idx2d = jnp.pad(idx2d, ((0, 0), (0, s_pad - s)), constant_values=-1)

    grid = (pl.cdiv(m, m_t), s_pad // s_t, pl.cdiv(n, n_t))

    passes = 3 if split_f32 else 1
    esize = src.dtype.itemsize
    cost = pl.CostEstimate(
        flops=2 * m * n * s_pad * passes,
        transcendentals=0,
        bytes_accessed=m * n * esize * (s_pad // s_t) + m * s * esize + s_pad * 4,
    )

    kernel = _make_gather_kernel(n, n_t, mask_tail, split_f32)

    return pl.pallas_call(
        kernel,
        out_shape=jax.ShapeDtypeStruct((m, s), src.dtype),
        grid=grid,
        in_specs=[
            pl.BlockSpec((1, s_t), lambda i, j, k: (0, j)),     # shared index
            pl.BlockSpec((m_t, n_t), lambda i, j, k: (i, k)),   # source tile
        ],
        out_specs=pl.BlockSpec((m_t, s_t), lambda i, j, k: (i, j)),
        scratch_shapes=[pltpu.VMEM((m_t, s_t), jnp.float32)],
        compiler_params=pltpu.CompilerParams(
            dimension_semantics=("parallel", "parallel", "arbitrary"),
            vmem_limit_bytes=_VMEM_LIMIT,
        ),
        cost_estimate=cost,
    )(idx2d, src)


def gather_features(x, idx):
    """x: [B, C, N], idx: [S] -> [B, C, S]  (== x[:, :, idx])."""
    b, c, n = x.shape
    s = idx.shape[0]
    return _gather_last_dim_2d(x.reshape(b * c, n), idx).reshape(b, c, s)


def gather_points(p, idx):
    """p: [B, N, D], idx: [S] -> [B, S, D]  (== p[:, idx])."""
    b, n, d = p.shape
    s = idx.shape[0]
    # Layout plumbing: put N last so the same lane-dense column-gather kernel
    # is reused and stores are lane-dense on S instead of an (S, 3) store.
    p_t = jnp.transpose(p, (0, 2, 1)).reshape(b * d, n)          # [B*D, N]
    out = _gather_last_dim_2d(p_t, idx)                          # [B*D, S]
    return jnp.transpose(out.reshape(b, d, s), (0, 2, 1))        # [B, S, D]


class RandomPointSample:
    """Pallas/JAX equivalent of torch3d.nn.RandomPointSample."""

    def __init__(self, num_samples):
        self.num_samples = num_samples

    def __call__(self, key, p, x=None):
        n = p.shape[1]
        # TODO(synk): randperm(N)[:S] index generation stays in plain JAX glue;
        # the gathers (the hot path) run inside the Pallas kernel.
        index = jax.random.permutation(key, n)[: self.num_samples]
        if x is not None:
            x = gather_features(x, index)
        p = gather_points(p, index)
        return p, x


if __name__ == "__main__":
    B, N, D, C, S = 2, 16, 3, 4, 8

    key = jax.random.PRNGKey(0)
    kp, kx, kidx = jax.random.split(key, 3)
    p = jax.random.normal(kp, (B, N, D), dtype=jnp.float32)
    x = jax.random.normal(kx, (B, C, N), dtype=jnp.float32)

    module = RandomPointSample(num_samples=S)
    p_out, x_out = jax.jit(module.__call__)(kidx, p, x)
    jax.block_until_ready((p_out, x_out))

    # Reference semantics: p[:, index], x[:, :, index] with the same index.
    index = jax.random.permutation(kidx, N)[:S]
    p_ref = jnp.take(p, index, axis=1)
    x_ref = jnp.take(x, index, axis=2)

    assert p_out.shape == (B, S, D) and p_out.dtype == p.dtype
    assert x_out.shape == (B, C, S) and x_out.dtype == x.dtype
    assert jnp.allclose(p_out, p_ref, atol=1e-6, rtol=0.0), "point gather mismatch"
    assert jnp.allclose(x_out, x_ref, atol=1e-6, rtol=0.0), "feature gather mismatch"

    print("KERNEL_OK")
</pallas_src>

<mosaic_0001>
module attributes {stable_mosaic.version = 11 : i64} {
  func.func @kernel(%arg0: i32, %arg1: i32, %arg2: i32, %arg3: memref<1x8xi32, #tpu.memory_space<vmem>>, %arg4: memref<6x16xf32, #tpu.memory_space<vmem>>, %arg5: memref<6x8xf32, #tpu.memory_space<vmem>>, %arg6: memref<6x8xf32, #tpu.memory_space<vmem>>) attributes {dimension_semantics = [#tpu.dimension_semantics<parallel>, #tpu.dimension_semantics<parallel>, #tpu.dimension_semantics<arbitrary>], iteration_bounds = array<i64: 1, 1, 1>, scalar_prefetch = 0 : i64, scratch_operands = 1 : i64, tpu.core_type = #tpu.core_type<tc>, window_params = [{transform_indices = @transform_0, window_bounds = array<i64: 1, 8>}, {transform_indices = @transform_1, window_bounds = array<i64: 6, 16>}, {transform_indices = @transform_2, window_bounds = array<i64: 6, 8>}]} {
    %c0_i32 = arith.constant 0 : i32
    %0 = arith.cmpi eq, %arg2, %c0_i32 : i32
    %1 = arith.extui %0 : i1 to i32
    %c0_i32_0 = arith.constant 0 : i32
    %2 = arith.cmpi ne, %1, %c0_i32_0 : i32
    scf.if %2 {
      %cst_12 = arith.constant 0.000000e+00 : f32
      %32 = vector.broadcast %cst_12 : f32 to vector<6x8xf32>
      %c0_13 = arith.constant 0 : index
      %c0_14 = arith.constant 0 : index
      %33 = vector.load %arg6[%c0_13, %c0_14] : memref<6x8xf32, #tpu.memory_space<vmem>>, vector<6x8xf32>
      tpu.vector_store %arg6[%c0_13, %c0_14], %32 {strides = array<i32>} : memref<6x8xf32, #tpu.memory_space<vmem>>, vector<6x8xf32>,
    } else {
    }
    %c16_i32 = arith.constant 16 : i32
    %3 = arith.muli %arg2, %c16_i32 : i32
    %4 = tpu.iota {dimensions = array<i32: 0>} : vector<16x8xi32>
    %5 = vector.broadcast %3 : i32 to vector<16x8xi32>
    %6 = arith.addi %4, %5 : vector<16x8xi32>
    %c0 = arith.constant 0 : index
    %c0_1 = arith.constant 0 : index
    %7 = vector.load %arg3[%c0, %c0_1] : memref<1x8xi32, #tpu.memory_space<vmem>>, vector<1x8xi32>
    %8 = vector.broadcast %7 : vector<1x8xi32> to vector<16x8xi32>
    %9 = arith.cmpi eq, %6, %8 : vector<16x8xi32>
    %10 = arith.extui %9 : vector<16x8xi1> to vector<16x8xi32>
    %11 = arith.sitofp %10 : vector<16x8xi32> to vector<16x8xf32>
    %12 = arith.truncf %11 : vector<16x8xf32> to vector<16x8xbf16>
    %c0_2 = arith.constant 0 : index
    %c0_3 = arith.constant 0 : index
    %13 = vector.load %arg4[%c0_2, %c0_3] : memref<6x16xf32, #tpu.memory_space<vmem>>, vector<6x16xf32>
    %14 = arith.truncf %13 : vector<6x16xf32> to vector<6x16xbf16>
    %15 = arith.extf %14 : vector<6x16xbf16> to vector<6x16xf32>
    %16 = arith.subf %13, %15 : vector<6x16xf32>
    %17 = arith.truncf %16 : vector<6x16xf32> to vector<6x16xbf16>
    %18 = arith.extf %17 : vector<6x16xbf16> to vector<6x16xf32>
    %19 = arith.subf %16, %18 : vector<6x16xf32>
    %20 = arith.truncf %19 : vector<6x16xf32> to vector<6x16xbf16>
    %cst = arith.constant dense<0.000000e+00> : vector<6x8xf32>
    %21 = tpu.matmul %14, %12, %cst {dimension_numbers = #tpu.dot_dimension_numbers<[1], [0], [0], [1], [0, 0, 1, 1], [], []>} : vector<6x16xbf16>, vector<16x8xbf16>, vector<6x8xf32> -> vector<6x8xf32>
    %cst_4 = arith.constant dense<0.000000e+00> : vector<6x8xf32>
    %22 = tpu.matmul %17, %12, %cst_4 {dimension_numbers = #tpu.dot_dimension_numbers<[1], [0], [0], [1], [0, 0, 1, 1], [], []>} : vector<6x16xbf16>, vector<16x8xbf16>, vector<6x8xf32> -> vector<6x8xf32>
    %23 = arith.addf %21, %22 : vector<6x8xf32>
    %cst_5 = arith.constant dense<0.000000e+00> : vector<6x8xf32>
    %24 = tpu.matmul %20, %12, %cst_5 {dimension_numbers = #tpu.dot_dimension_numbers<[1], [0], [0], [1], [0, 0, 1, 1], [], []>} : vector<6x16xbf16>, vector<16x8xbf16>, vector<6x8xf32> -> vector<6x8xf32>
    %25 = arith.addf %23, %24 : vector<6x8xf32>
    %c0_6 = arith.constant 0 : index
    %c0_7 = arith.constant 0 : index
    %26 = vector.load %arg6[%c0_6, %c0_7] : memref<6x8xf32, #tpu.memory_space<vmem>>, vector<6x8xf32>
    %27 = arith.addf %26, %25 : vector<6x8xf32>
    %c0_8 = arith.constant 0 : index
    %c0_9 = arith.constant 0 : index
    %28 = vector.load %arg6[%c0_8, %c0_9] : memref<6x8xf32, #tpu.memory_space<vmem>>, vector<6x8xf32>
    tpu.vector_store %arg6[%c0_8, %c0_9], %27 {strides = array<i32>} : memref<6x8xf32, #tpu.memory_space<vmem>>, vector<6x8xf32>,
    %c0_i32_10 = arith.constant 0 : i32
    %29 = arith.cmpi eq, %arg2, %c0_i32_10 : i32
    %30 = arith.extui %29 : i1 to i32
    %c0_i32_11 = arith.constant 0 : i32
    %31 = arith.cmpi ne, %30, %c0_i32_11 : i32
    scf.if %31 {
      %c0_12 = arith.constant 0 : index
      %c0_13 = arith.constant 0 : index
      %32 = vector.load %arg6[%c0_12, %c0_13] : memref<6x8xf32, #tpu.memory_space<vmem>>, vector<6x8xf32>
      %c0_14 = arith.constant 0 : index
      %c0_15 = arith.constant 0 : index
      %33 = vector.load %arg5[%c0_14, %c0_15] : memref<6x8xf32, #tpu.memory_space<vmem>>, vector<6x8xf32>
      tpu.vector_store %arg5[%c0_14, %c0_15], %32 {strides = array<i32>} : memref<6x8xf32, #tpu.memory_space<vmem>>, vector<6x8xf32>,
    } else {
    }
    return
  }
  func.func @transform_0(%arg0: i32, %arg1: i32, %arg2: i32) -> (i32, i32) {
    %c0_i32 = arith.constant 0 : i32
    %c0_i32_0 = arith.constant 0 : i32
    return %c0_i32, %arg1 : i32, i32
  }
  func.func @transform_1(%arg0: i32, %arg1: i32, %arg2: i32) -> (i32, i32) {
    %c0_i32 = arith.constant 0 : i32
    return %arg0, %arg2 : i32, i32
  }
  func.func @transform_2(%arg0: i32, %arg1: i32, %arg2: i32) -> (i32, i32) {
    %c0_i32 = arith.constant 0 : i32
    return %arg0, %arg1 : i32, i32
  }
}

module attributes {stable_mosaic.version = 11 : i64} {
  func.func @kernel(%arg0: i32, %arg1: i32, %arg2: i32, %arg3: memref<1x8xi32, #tpu.memory_space<vmem>>, %arg4: memref<8x16xf32, #tpu.memory_space<vmem>>, %arg5: memref<8x8xf32, #tpu.memory_space<vmem>>, %arg6: memref<8x8xf32, #tpu.memory_space<vmem>>) attributes {dimension_semantics = [#tpu.dimension_semantics<parallel>, #tpu.dimension_semantics<parallel>, #tpu.dimension_semantics<arbitrary>], iteration_bounds = array<i64: 1, 1, 1>, scalar_prefetch = 0 : i64, scratch_operands = 1 : i64, tpu.core_type = #tpu.core_type<tc>, window_params = [{transform_indices = @transform_0, window_bounds = array<i64: 1, 8>}, {transform_indices = @transform_1, window_bounds = array<i64: 8, 16>}, {transform_indices = @transform_2, window_bounds = array<i64: 8, 8>}]} {
    %c0_i32 = arith.constant 0 : i32
    %0 = arith.cmpi eq, %arg2, %c0_i32 : i32
    %1 = arith.extui %0 : i1 to i32
    %c0_i32_0 = arith.constant 0 : i32
    %2 = arith.cmpi ne, %1, %c0_i32_0 : i32
    scf.if %2 {
      %cst_12 = arith.constant 0.000000e+00 : f32
      %32 = vector.broadcast %cst_12 : f32 to vector<8x8xf32>
      %c0_13 = arith.constant 0 : index
      %c0_14 = arith.constant 0 : index
      %33 = vector.load %arg6[%c0_13, %c0_14] : memref<8x8xf32, #tpu.memory_space<vmem>>, vector<8x8xf32>
      tpu.vector_store %arg6[%c0_13, %c0_14], %32 {strides = array<i32>} : memref<8x8xf32, #tpu.memory_space<vmem>>, vector<8x8xf32>,
    } else {
    }
    %c16_i32 = arith.constant 16 : i32
    %3 = arith.muli %arg2, %c16_i32 : i32
    %4 = tpu.iota {dimensions = array<i32: 0>} : vector<16x8xi32>
    %5 = vector.broadcast %3 : i32 to vector<16x8xi32>
    %6 = arith.addi %4, %5 : vector<16x8xi32>
    %c0 = arith.constant 0 : index
    %c0_1 = arith.constant 0 : index
    %7 = vector.load %arg3[%c0, %c0_1] : memref<1x8xi32, #tpu.memory_space<vmem>>, vector<1x8xi32>
    %8 = vector.broadcast %7 : vector<1x8xi32> to vector<16x8xi32>
    %9 = arith.cmpi eq, %6, %8 : vector<16x8xi32>
    %10 = arith.extui %9 : vector<16x8xi1> to vector<16x8xi32>
    %11 = arith.sitofp %10 : vector<16x8xi32> to vector<16x8xf32>
    %12 = arith.truncf %11 : vector<16x8xf32> to vector<16x8xbf16>
    %c0_2 = arith.constant 0 : index
    %c0_3 = arith.constant 0 : index
    %13 = vector.load %arg4[%c0_2, %c0_3] : memref<8x16xf32, #tpu.memory_space<vmem>>, vector<8x16xf32>
    %14 = arith.truncf %13 : vector<8x16xf32> to vector<8x16xbf16>
    %15 = arith.extf %14 : vector<8x16xbf16> to vector<8x16xf32>
    %16 = arith.subf %13, %15 : vector<8x16xf32>
    %17 = arith.truncf %16 : vector<8x16xf32> to vector<8x16xbf16>
    %18 = arith.extf %17 : vector<8x16xbf16> to vector<8x16xf32>
    %19 = arith.subf %16, %18 : vector<8x16xf32>
    %20 = arith.truncf %19 : vector<8x16xf32> to vector<8x16xbf16>
    %cst = arith.constant dense<0.000000e+00> : vector<8x8xf32>
    %21 = tpu.matmul %14, %12, %cst {dimension_numbers = #tpu.dot_dimension_numbers<[1], [0], [0], [1], [0, 0, 1, 1], [], []>} : vector<8x16xbf16>, vector<16x8xbf16>, vector<8x8xf32> -> vector<8x8xf32>
    %cst_4 = arith.constant dense<0.000000e+00> : vector<8x8xf32>
    %22 = tpu.matmul %17, %12, %cst_4 {dimension_numbers = #tpu.dot_dimension_numbers<[1], [0], [0], [1], [0, 0, 1, 1], [], []>} : vector<8x16xbf16>, vector<16x8xbf16>, vector<8x8xf32> -> vector<8x8xf32>
    %23 = arith.addf %21, %22 : vector<8x8xf32>
    %cst_5 = arith.constant dense<0.000000e+00> : vector<8x8xf32>
    %24 = tpu.matmul %20, %12, %cst_5 {dimension_numbers = #tpu.dot_dimension_numbers<[1], [0], [0], [1], [0, 0, 1, 1], [], []>} : vector<8x16xbf16>, vector<16x8xbf16>, vector<8x8xf32> -> vector<8x8xf32>
    %25 = arith.addf %23, %24 : vector<8x8xf32>
    %c0_6 = arith.constant 0 : index
    %c0_7 = arith.constant 0 : index
    %26 = vector.load %arg6[%c0_6, %c0_7] : memref<8x8xf32, #tpu.memory_space<vmem>>, vector<8x8xf32>
    %27 = arith.addf %26, %25 : vector<8x8xf32>
    %c0_8 = arith.constant 0 : index
    %c0_9 = arith.constant 0 : index
    %28 = vector.load %arg6[%c0_8, %c0_9] : memref<8x8xf32, #tpu.memory_space<vmem>>, vector<8x8xf32>
    tpu.vector_store %arg6[%c0_8, %c0_9], %27 {strides = array<i32>} : memref<8x8xf32, #tpu.memory_space<vmem>>, vector<8x8xf32>,
    %c0_i32_10 = arith.constant 0 : i32
    %29 = arith.cmpi eq, %arg2, %c0_i32_10 : i32
    %30 = arith.extui %29 : i1 to i32
    %c0_i32_11 = arith.constant 0 : i32
    %31 = arith.cmpi ne, %30, %c0_i32_11 : i32
    scf.if %31 {
      %c0_12 = arith.constant 0 : index
      %c0_13 = arith.constant 0 : index
      %32 = vector.load %arg6[%c0_12, %c0_13] : memref<8x8xf32, #tpu.memory_space<vmem>>, vector<8x8xf32>
      %c0_14 = arith.constant 0 : index
      %c0_15 = arith.constant 0 : index
      %33 = vector.load %arg5[%c0_14, %c0_15] : memref<8x8xf32, #tpu.memory_space<vmem>>, vector<8x8xf32>
      tpu.vector_store %arg5[%c0_14, %c0_15], %32 {strides = array<i32>} : memref<8x8xf32, #tpu.memory_space<vmem>>, vector<8x8xf32>,
    } else {
    }
    return
  }
  func.func @transform_0(%arg0: i32, %arg1: i32, %arg2: i32) -> (i32, i32) {
    %c0_i32 = arith.constant 0 : i32
    %c0_i32_0 = arith.constant 0 : i32
    return %c0_i32, %arg1 : i32, i32
  }
  func.func @transform_1(%arg0: i32, %arg1: i32, %arg2: i32) -> (i32, i32) {
    %c0_i32 = arith.constant 0 : i32
    return %arg0, %arg2 : i32, i32
  }
  func.func @transform_2(%arg0: i32, %arg1: i32, %arg2: i32) -> (i32, i32) {
    %c0_i32 = arith.constant 0 : i32
    return %arg0, %arg1 : i32, i32
  }
}

</mosaic_0001>

<bundles_post_ra>
// kernel: a_call__.3
= control target key start
LH: loop header
LB: loop body
LE: loop exit
PB: predicated region body
PF: predicated region fallthrough
CT: control target
= control target key end

     0   :  { %v20_v0 = vlaneseq  ;;  %s189_s0 = inlined_call_operand.vmem [shape: s32[1,8], index: 0, kind: input, shape index: {}]   ;;  %s190_s1 = inlined_call_operand.vmem [shape: f32[8,16], index: 1, kind: input, shape index: {}]   ;;  %s191_s2 = inlined_call_operand.hbm [shape: f32[8,8], index: 2, kind: output, shape index: {}]  }
   0x1   :  { %v132_v1 = vld [vmem:[%s189_s0] ss:$0 sm:$0xff] }
   0x2   :  { %v35_v2 = vld [vmem:[%s190_s1] sm:$0xff] }
   0x3   :  { %7 = vsyncpa [#allocation4], 0  ;;  %v21_v3 = vshrl.u32 %v20_v0, 7  ;;  %v36_v4 = vpack.c.bf16 %v35_v2, %v35_v2  ;;  %v159_v8 = vmov 1.0|1.0   ;;  %vm43_vm3 = vcmask 130048  }
   0x4   :  { %vm17_vm4 = vcmask 64512   ;;  %v160_v13 = vmov 0.0   ;;  %s161_s0 = smov [#allocation3]   ;;  %s109_s15 = sshll.u32 %s191_s2, 4  ;;  %s110_s15 = int_to_ptr.hbm [resolvable:$true] %s109_s15 }
   0x5   :  { %v22_v5 = vadd.s32 8, %v21_v3  ;;  %vm28_vm0 = vcmp.eq.s32.totalorder %v21_v3, %v132_v1  ;;  %v37_v6 = vunpack.c.l.bf16 %v36_v4  ;;  %18 = vst.msk [vmem:[#allocation2] sm:$0xff] %vm17_vm4, %v160_v13  ;;  %s107_s1 = sshll.u32 %s161_s0, 4  ;;  %s108_s1 = int_to_ptr.vmem [resolvable:$true] %s107_s1 }
   0x7   :  { %vm29_vm1 = vcmp.eq.s32.totalorder %v22_v5, %v132_v1  ;;  %v38_v7 = vsub.f32 %v35_v2, %v37_v6 }
   0x8   :  { %vm120_vm2 = vmpackc.low %vm29_vm1, %vm28_vm0 }
   0x9   :  { %121 = vmatpush.bf16.msk.msra.mxu0 %vm120_vm2, %v159_v8  ;;  %124 = vmatpush.bf16.msk.msra.mxu1 %vm120_vm2, %v159_v8  ;;  %v39_v9 = vpack.c.bf16 %v38_v7, %v38_v7 }
   0xa   :  { %127 = vmatpush.bf16.msk.msra.mxu2 %vm120_vm2, %v159_v8 }
   0xb   :  { %v40_v10 = vunpack.c.l.bf16 %v39_v9 }
   0xc   :  { %122 = vmatmul.msk.bf16.vlgmr.msra.gmra.mxu0 %vm43_vm3, %v39_v9  ;;  %125 = vmatmul.msk.bf16.vlgmr.msra.gmra.mxu1 %vm43_vm3, %v36_v4  ;;  %v93_v20 = vld [vmem:[#allocation2] sm:$0xff] }
   0xd   :  { %v41_v11 = vsub.f32 %v38_v7, %v40_v10 }
   0xf   :  { %v42_v12 = vpack.c.bf16 %v41_v11, %v41_v11 }
  0x11   :  { %128 = vmatmul.msk.bf16.vlgmr.msra.gmra.mxu2 %vm43_vm3, %v42_v12 }
  0x89   :  { %v56_v14 = vpop.f32.mrf.mxu0  ;;  %v72_v15 = vpop.f32.mrf.mxu1 }
  0x8a   :  { %v73_v16 = vadd.f32 %v72_v15, %v56_v14 }
  0x91   :  { %v58_v17 = vpop.f32.mrf.mxu0  ;;  %v74_v18 = vpop.f32.mrf.mxu1 }
  0x94   :  { %v88_v19 = vpop.f32.mrf.mxu2 }
  0x95   :  { %v92_v21 = vadd.f32 %v88_v19, %v73_v16 }
  0x97   :  { %v94_v22 = vadd.f32 %v93_v20, %v92_v21 }
  0x99   :  { %96 = vst.msk [vmem:[#allocation2] sm:$0xff] %vm17_vm4, %v94_v22 }
  0x9c   :  { %v90_v23 = vpop.f32.mrf.mxu2 }
  0xa0   :  { %v100_v24 = vld [vmem:[#allocation2] sm:$0xff] }
  0xa1   :  { %101 = vst.msk [vmem:[#allocation3] sm:$0xff] %vm17_vm4, %v100_v24 }
  0xa2   :  { %112 = dma.vmem_to_hbm [thread:$0]  %s108_s1, 128, %s110_s15, [#allocation4]  }
  0xa3   :  { %157 = dma.done.wait [#allocation4], 128  }
  0xa4   :  { %158 = vsyncadd [#allocation4], 4294967168 }
  0xa5   :  { %117 = vsyncpa [#allocation4], 1 }

// kernel: a_call__.2
= control target key start
LH: loop header
LB: loop body
LE: loop exit
PB: predicated region body
PF: predicated region fallthrough
CT: control target
= control target key end

     0   :  { %v19_v0 = vlaneseq  ;;  %v119_v8 = vmov 1.0|1.0   ;;  %vm42_vm3 = vcmask 130048   ;;  %vm16_vm4 = vcmask 62464   ;;  %s148_s0 = inlined_call_operand.vmem [shape: s32[1,8], index: 0, kind: input, shape index: {}]   ;;  %s149_s1 = inlined_call_operand.vmem [shape: f32[6,16], index: 1, kind: input, shape index: {}]   ;;  %s150_s2 = inlined_call_operand.vmem [shape: f32[6,8], index: 2, kind: output, shape index: {}]  }
   0x1   :  { %v118_v1 = vld [vmem:[%s148_s0] ss:$0 sm:$0xff]  ;;  %v120_v13 = vmov 0.0  }
   0x2   :  { %v34_v2 = vld [vmem:[%s149_s1] sm:$0x3f]  ;;  %v20_v3 = vshrl.u32 %v19_v0, 7  ;;  %17 = vst.msk [vmem:[#allocation2] sm:$0x3f] %vm16_vm4, %v120_v13 }
   0x3   :  { %v35_v4 = vpack.c.bf16 %v34_v2, %v34_v2 }
   0x4   :  { %v21_v5 = vadd.s32 8, %v20_v3  ;;  %vm27_vm0 = vcmp.eq.s32.totalorder %v20_v3, %v118_v1 }
   0x5   :  { %v36_v6 = vunpack.c.l.bf16 %v35_v4 }
   0x6   :  { %vm28_vm1 = vcmp.eq.s32.totalorder %v21_v5, %v118_v1 }
   0x7   :  { %v37_v7 = vsub.f32 %v34_v2, %v36_v6  ;;  %vm107_vm2 = vmpackc.low %vm28_vm1, %vm27_vm0 }
   0x8   :  { %108 = vmatpush.bf16.msk.msra.mxu0 %vm107_vm2, %v119_v8  ;;  %111 = vmatpush.bf16.msk.msra.mxu1 %vm107_vm2, %v119_v8 }
   0x9   :  { %v38_v9 = vpack.c.bf16 %v37_v7, %v37_v7  ;;  %114 = vmatpush.bf16.msk.msra.mxu2 %vm107_vm2, %v119_v8  ;;  %v92_v20 = vld [vmem:[#allocation2] sm:$0x3f] }
   0xb   :  { %v39_v10 = vunpack.c.l.bf16 %v38_v9  ;;  %109 = vmatmul.msk.bf16.vlgmr.msra.gmra.mxu0 %vm42_vm3, %v38_v9  ;;  %112 = vmatmul.msk.bf16.vlgmr.msra.gmra.mxu1 %vm42_vm3, %v35_v4 }
   0xd   :  { %v40_v11 = vsub.f32 %v37_v7, %v39_v10 }
   0xf   :  { %v41_v12 = vpack.c.bf16 %v40_v11, %v40_v11 }
  0x11   :  { %115 = vmatmul.msk.bf16.vlgmr.msra.gmra.mxu2 %vm42_vm3, %v41_v12 }
  0x88   :  { %v55_v14 = vpop.f32.mrf.mxu0  ;;  %v71_v15 = vpop.f32.mrf.mxu1 }
  0x89   :  { %v72_v16 = vadd.f32 %v71_v15, %v55_v14 }
  0x90   :  { %v57_v17 = vpop.f32.mrf.mxu0  ;;  %v73_v18 = vpop.f32.mrf.mxu1 }
  0x94   :  { %v87_v19 = vpop.f32.mrf.mxu2 }
  0x95   :  { %v91_v21 = vadd.f32 %v87_v19, %v72_v16 }
  0x97   :  { %v93_v22 = vadd.f32 %v92_v20, %v91_v21 }
  0x99   :  { %95 = vst.msk [vmem:[#allocation2] sm:$0x3f] %vm16_vm4, %v93_v22 }
  0x9c   :  { %v89_v23 = vpop.f32.mrf.mxu2 }
  0xa0   :  { %v99_v24 = vld [vmem:[#allocation2] sm:$0x3f] }
  0xa1   :  { %100 = vst.msk [vmem:[%s150_s2] sm:$0x3f] %vm16_vm4, %v99_v24 }

</bundles_post_ra>
